<compile_context>
chip_gen: v6e
topology: v6e:2x2x1
jax: 0.10.0
libtpu: 0.0.40
codegen_flags: <defaults>
</compile_context>

<pallas_src>
import math

import jax
import jax.numpy as jnp
from jax.experimental import pallas as pl
from jax.experimental.pallas import tpu as pltpu


MAX_PERIOD = 10000.0


def _embed_kernel(x_ref, freqs_ref, out_ref):
    # x_ref     : (TB, D)          float32  (timestep-like scalars)
    # freqs_ref : (1, half)        float32  (precomputed frequency table)
    # out_ref   : (TB, D*outdim)   float32  (lane-dense output slab)
    half = freqs_ref.shape[-1]
    tb, d = x_ref.shape
    outdim = out_ref.shape[-1] // d

    x = x_ref[...]            # (TB, D)
    freqs = freqs_ref[...]    # (1, half)

    # D is the number of conditioning dims (tiny, e.g. 1-4): static unroll.
    for j in range(d):
        args = x[:, j:j + 1] * freqs                              # (TB, half)
        base = j * outdim
        out_ref[:, base:base + half] = jnp.cos(args)              # cos first
        out_ref[:, base + half:base + 2 * half] = jnp.sin(args)   # then sin
        if outdim % 2:
            # odd outdim: trailing zero column (matches torch impl)
            out_ref[:, base + 2 * half:base + outdim] = jnp.zeros(
                (tb, 1), jnp.float32
            )


def _choose_block_rows(b, d, outdim):
    """Rows per grid step: multiple of 8, bounded so double-buffered blocks
    stay well inside v7x's 32 MiB default scoped VMEM (v5e/v6e have more)."""
    # per-row VMEM: input row (lane-padded to >=128) + output row, f32
    row_bytes = max(d, 128) * 4 + d * outdim * 4
    budget = 8 * 1024 * 1024          # per buffer; x2 buffers per array << 32 MiB
    tb = min(1024, max(8, budget // row_bytes))
    tb -= tb % 8
    tb = max(tb, 8)
    return b if b <= tb else tb


def concat_timestep_embedder_nd(x, outdim, block_rows=None):
    """JAX/Pallas equivalent of ConcatTimestepEmbedderND(outdim).forward(x)."""
    x = jnp.asarray(x)
    if x.ndim == 1:
        x = x[:, None]
    assert x.ndim == 2, "expected (B, D) input"
    assert outdim >= 2, "outdim must be >= 2 (half-width sinusoid table)"

    b, d = x.shape
    half = outdim // 2

    x32 = x.astype(jnp.float32)
    # freqs[j] = exp(-ln(max_period) * j / half), hoisted out of the kernel.
    freqs = jnp.exp(
        -(math.log(MAX_PERIOD) / half) * jnp.arange(half, dtype=jnp.float32)
    )[None, :]                                              # (1, half)

    tb = block_rows if block_rows is not None else _choose_block_rows(b, d, outdim)
    grid = (pl.cdiv(b, tb),)

    out = pl.pallas_call(
        _embed_kernel,
        out_shape=jax.ShapeDtypeStruct((b, d * outdim), jnp.float32),
        grid_spec=pl.GridSpec(
            grid=grid,
            in_specs=[
                pl.BlockSpec((tb, d), lambda i: (i, 0)),        # x rows
                pl.BlockSpec((1, half), lambda i: (0, 0)),      # shared freqs
            ],
            out_specs=pl.BlockSpec((tb, d * outdim), lambda i: (i, 0)),
        ),
        compiler_params=pltpu.CompilerParams(
            # each grid step is independent -> shard across TCs on v7x
            dimension_semantics=("parallel",),
        ),
        cost_estimate=pl.CostEstimate(
            flops=2 * b * d * half,                 # arg multiply + stores
            transcendentals=2 * b * d * half,       # cos + sin
            bytes_accessed=b * d * 4 + half * 4 + b * d * outdim * 4,
        ),
    )(x32, freqs)
    return out                                      # already (B, D*outdim)

    # TODO(synk): `.to(get_current_device())` and the LoRA-adapter plumbing of
    # AbstractEmbModel are host/framework mechanics with no kernel equivalent.


def _reference(x, outdim):
    """Pure-JAX reference for correctness check."""
    x = jnp.asarray(x)
    if x.ndim == 1:
        x = x[:, None]
    b, dims = x.shape
    t = x.reshape(-1).astype(jnp.float32)
    half = outdim // 2
    freqs = jnp.exp(
        -math.log(MAX_PERIOD) * jnp.arange(half, dtype=jnp.float32) / half
    )
    args = t[:, None] * freqs[None, :]
    emb = jnp.concatenate([jnp.cos(args), jnp.sin(args)], axis=-1)
    if outdim % 2:
        emb = jnp.concatenate([emb, jnp.zeros_like(emb[:, :1])], axis=-1)
    return emb.reshape(b, dims * outdim)


if __name__ == "__main__":
    key = jax.random.PRNGKey(0)

    # Primary case: (B, D) conditioning values (e.g. image size / crop coords)
    B, D, OUTDIM = 2, 2, 32
    x = jax.random.uniform(key, (B, D), dtype=jnp.float32) * 1024.0

    out = concat_timestep_embedder_nd(x, OUTDIM)
    out = jax.block_until_ready(out)
    assert out.shape == (B, D * OUTDIM)
    assert out.dtype == jnp.float32
    ref = _reference(x, OUTDIM)
    assert jnp.allclose(out, ref, atol=1e-5, rtol=1e-5), "mismatch vs reference"

    # Odd outdim (exercises the zero-pad column) + non-multiple-of-8 B
    B2, D2, OUTDIM2 = 5, 3, 33
    x2 = jax.random.uniform(jax.random.PRNGKey(1), (B2, D2), dtype=jnp.float32) * 512.0
    out2 = jax.block_until_ready(concat_timestep_embedder_nd(x2, OUTDIM2))
    ref2 = _reference(x2, OUTDIM2)
    assert out2.shape == (B2, D2 * OUTDIM2)
    assert jnp.allclose(out2, ref2, atol=1e-5, rtol=1e-5), "odd-outdim mismatch"

    # Multi-block / partial-last-block path (forced small block_rows)
    B3, D3, OUTDIM3 = 20, 2, 64
    x3 = jax.random.uniform(jax.random.PRNGKey(2), (B3, D3), dtype=jnp.float32) * 2048.0
    out3 = jax.block_until_ready(
        concat_timestep_embedder_nd(x3, OUTDIM3, block_rows=8)
    )
    ref3 = _reference(x3, OUTDIM3)
    assert out3.shape == (B3, D3 * OUTDIM3)
    assert jnp.allclose(out3, ref3, atol=1e-5, rtol=1e-5), "tiled-grid mismatch"

    print("KERNEL_OK")
</pallas_src>

<mosaic_0001>
module attributes {stable_mosaic.version = 11 : i64} {
  func.func @_embed_kernel(%arg0: i32, %arg1: memref<2x2xf32, #tpu.memory_space<vmem>>, %arg2: memref<1x16xf32, #tpu.memory_space<vmem>>, %arg3: memref<2x64xf32, #tpu.memory_space<vmem>>) attributes {dimension_semantics = [#tpu.dimension_semantics<parallel>], iteration_bounds = array<i64: 1>, scalar_prefetch = 0 : i64, scratch_operands = 0 : i64, tpu.core_type = #tpu.core_type<tc>, window_params = [{transform_indices = @transform_0, window_bounds = array<i64: 2, 2>}, {pipeline_mode = #tpu.pipeline_mode<synchronous>, transform_indices = @transform_1, window_bounds = array<i64: 1, 16>}, {transform_indices = @transform_2, window_bounds = array<i64: 2, 64>}]} {
    %c0 = arith.constant 0 : index
    %c0_0 = arith.constant 0 : index
    %0 = vector.load %arg1[%c0, %c0_0] : memref<2x2xf32, #tpu.memory_space<vmem>>, vector<2x2xf32>
    %c0_1 = arith.constant 0 : index
    %c0_2 = arith.constant 0 : index
    %1 = vector.load %arg2[%c0_1, %c0_2] : memref<1x16xf32, #tpu.memory_space<vmem>>, vector<1x16xf32>
    %2 = vector.extract_strided_slice %0 {offsets = [0, 0], sizes = [2, 1], strides = [1, 1]} : vector<2x2xf32> to vector<2x1xf32>
    %3 = vector.broadcast %2 : vector<2x1xf32> to vector<2x16xf32>
    %4 = vector.broadcast %1 : vector<1x16xf32> to vector<2x16xf32>
    %5 = arith.mulf %3, %4 : vector<2x16xf32>
    %6 = math.cos %5 : vector<2x16xf32>
    %c0_3 = arith.constant 0 : index
    %c0_4 = arith.constant 0 : index
    %7 = vector.load %arg3[%c0_3, %c0_4] : memref<2x64xf32, #tpu.memory_space<vmem>>, vector<2x16xf32>
    tpu.vector_store %arg3[%c0_3, %c0_4], %6 {strides = array<i32>} : memref<2x64xf32, #tpu.memory_space<vmem>>, vector<2x16xf32>,
    %8 = math.sin %5 : vector<2x16xf32>
    %c0_5 = arith.constant 0 : index
    %c16 = arith.constant 16 : index
    %9 = vector.load %arg3[%c0_5, %c16] : memref<2x64xf32, #tpu.memory_space<vmem>>, vector<2x16xf32>
    tpu.vector_store %arg3[%c0_5, %c16], %8 {strides = array<i32>} : memref<2x64xf32, #tpu.memory_space<vmem>>, vector<2x16xf32>,
    %10 = vector.extract_strided_slice %0 {offsets = [0, 1], sizes = [2, 1], strides = [1, 1]} : vector<2x2xf32> to vector<2x1xf32>
    %11 = vector.broadcast %10 : vector<2x1xf32> to vector<2x16xf32>
    %12 = vector.broadcast %1 : vector<1x16xf32> to vector<2x16xf32>
    %13 = arith.mulf %11, %12 : vector<2x16xf32>
    %14 = math.cos %13 : vector<2x16xf32>
    %c0_6 = arith.constant 0 : index
    %c32 = arith.constant 32 : index
    %15 = vector.load %arg3[%c0_6, %c32] : memref<2x64xf32, #tpu.memory_space<vmem>>, vector<2x16xf32>
    tpu.vector_store %arg3[%c0_6, %c32], %14 {strides = array<i32>} : memref<2x64xf32, #tpu.memory_space<vmem>>, vector<2x16xf32>,
    %16 = math.sin %13 : vector<2x16xf32>
    %c0_7 = arith.constant 0 : index
    %c48 = arith.constant 48 : index
    %17 = vector.load %arg3[%c0_7, %c48] : memref<2x64xf32, #tpu.memory_space<vmem>>, vector<2x16xf32>
    tpu.vector_store %arg3[%c0_7, %c48], %16 {strides = array<i32>} : memref<2x64xf32, #tpu.memory_space<vmem>>, vector<2x16xf32>,
    return
  }
  func.func @transform_0(%arg0: i32) -> (i32, i32) {
    %c0_i32 = arith.constant 0 : i32
    %c0_i32_0 = arith.constant 0 : i32
    return %arg0, %c0_i32 : i32, i32
  }
  func.func @transform_1(%arg0: i32) -> (i32, i32) {
    %c0_i32 = arith.constant 0 : i32
    %c0_i32_0 = arith.constant 0 : i32
    %c0_i32_1 = arith.constant 0 : i32
    return %c0_i32, %c0_i32_0 : i32, i32
  }
  func.func @transform_2(%arg0: i32) -> (i32, i32) {
    %c0_i32 = arith.constant 0 : i32
    %c0_i32_0 = arith.constant 0 : i32
    return %arg0, %c0_i32 : i32, i32
  }
}

</mosaic_0001>

<bundles_post_ra>
// kernel: tpu_custom_call.1
= control target key start
LH: loop header
LB: loop body
LE: loop exit
PB: predicated region body
PF: predicated region fallthrough
CT: control target
= control target key end

     0   :  { %7 = vsyncpa [#allocation3], 0  ;;  %s730_s0 = inlined_call_operand.hbm [shape: f32[2,2], index: 0, kind: input, shape index: {}]   ;;  %s731_s1 = inlined_call_operand.vmem [shape: f32[1,16], index: 1, kind: input, shape index: {}]   ;;  %s732_s2 = inlined_call_operand.hbm [shape: f32[2,64], index: 2, kind: output, shape index: {}]  }
   0x1   :  { %8 = vsyncpa [#allocation4], 0  ;;  %s584_s9 = smov [#allocation2]  }
   0x2   :  { %s15_s10 = sshll.u32 %s584_s9, 4  ;;  %s16_s10 = int_to_ptr.vmem [resolvable:$true] %s15_s10 }
   0x3   :  { %s548_s11 = scalar_lea.vmem %s16_s10, 32  ;;  %p553_p1 = scmp.lt.s32.totalorder %s16_s10, %s16_s10 }
   0x4   :  { %p549_p0 = scmp.ne.s32.totalorder %s16_s10, %s548_s11  ;;  %p554_p2 = scmp.lt.s32.totalorder %s548_s11, %s548_s11 }
   0x6   :  { %p555_p3 = por %p554_p2, %p553_p1 }
   0x8   :  { %p556_p4 = pnand %p555_p3, %p549_p0 }
   0xa   :  { %559 = shalt.err (!%p556_p4)
}
   0xb   :  { %18 = dma.hbm_to_vmem [thread:$0]  %s730_s0, 32, %s16_s10, [#allocation3]  }
   0xc   :  { %580 = dma.done.wait [#allocation3], 32  }
   0xd   :  { %581 = vsyncadd [#allocation3], 4294967264  ;;  %v585_v0 = vmov 0   ;;  %v24_v1 = vld [vmem:[#allocation2] sm:$0x3]  ;;  %v586_v2 = vmov 1  }
   0xe   :  { %530 = vset.pattern.permute.xlu0 %v585_v0  ;;  %v492_v3 = vld [vmem:[%s731_s1] ss:$0 sm:$0xff]  ;;  %v587_v26 = vmov 2102212464   ;;  %v588_v28 = vmov 920167782  }
   0xf   :  { %28 = vperm.xlu0 %530, %v24_v1   ;;  %v589_v32 = vmov 1326507024   ;;  %v590_v36 = vmov 683565275   ;;  %v591_v38 = vmov 2475754826  }
  0x10   :  { %v592_v40 = vmov 2131351028   ;;  %s593_s0 = smov 16   ;;  %s594_s1 = smov 32  }
  0x11   :  { %s595_s16 = smov 48   ;;  %s596_s17 = smov [#allocation5]  }
  0x12   :  { %s483_s18 = sshll.u32 %s596_s17, 4  ;;  %s484_s18 = int_to_ptr.vmem [resolvable:$true] %s483_s18 }
  0x13   :  { %531 = vset.pattern.permute.xlu0 %v586_v2  ;;  %s560_s19 = scalar_lea.vmem %s484_s18, 32  ;;  %p565_p6 = scmp.lt.s32.totalorder %s484_s18, %s484_s18 }
  0x14   :  { %254 = vperm.xlu0 %531, %v24_v1   ;;  %p561_p5 = scmp.ne.s32.totalorder %s484_s18, %s560_s19  ;;  %p566_p7 = scmp.lt.s32.totalorder %s560_s19, %s560_s19 }
  0x16   :  { %p567_p8 = por %p566_p7, %p565_p6 }
  0x18   :  { %p568_p9 = pnand %p567_p8, %p561_p5 }
  0x8a   :  { %v29_v4 = vpop.permute.xlu0 %28 }
  0x8b   :  { %v618_v5 = vmul.f32 %v492_v3, %v29_v4 }
  0x8d   :  { %v41_v6 = vand.u32 2139095040, %v618_v5  ;;  %v38_v11 = vand.u32 2147483647, %v618_v5 }
  0x8f   :  { %v42_v7 = vshrl.u32 %v41_v6, 23  ;;  %v255_v8 = vpop.permute.xlu0 %254  ;;  %v630_v17 = vand.u32 8388607, %v38_v11 }
  0x90   :  { %v621_v9 = vmul.f32 %v492_v3, %v255_v8 }
  0x91   :  { %v493_v10 = vadd.s32 4294967169, %v42_v7  ;;  %v46_v25 = vor.u32 8388608, %v630_v17 }
  0x92   :  { %v258_v12 = vand.u32 2147483647, %v621_v9  ;;  %v261_v13 = vand.u32 2139095040, %v621_v9  ;;  %vm260_vm14 = vcmp.lt.s32.totalorder %v621_v9, 0 }
  0x93   :  { %v48_v14 = vadd.s32 1, %v493_v10 }
  0x94   :  { %v262_v15 = vshrl.u32 %v261_v13, 23  ;;  %v265_v16 = vand.u32 8388607, %v258_v12  ;;  %vm706_vm15 = vcmp.le.f32.partialorder %v258_v12, 0.7853982 }
  0x95   :  { %vm49_vm0 = vcmp.gt.s32.totalorder %v48_v14, 0 }
  0x96   :  { %v50_v18 = vsel %vm49_vm0, %v48_v14, 0  ;;  %v501_v19 = vadd.s32 4294967169, %v262_v15  ;;  %v266_v20 = vor.u32 8388608, %v265_v16  ;;  %vm40_vm0 = vcmp.lt.s32.totalorder %v618_v5, 0 }
  0x97   :  { %v632_v21 = vshrl.u32 %v50_v18, 5  ;;  %v52_v22 = vand.u32 31, %v50_v18 }
  0x98   :  { %v268_v23 = vadd.s32 1, %v501_v19  ;;  %v637_v30 = vshll.u32 %v266_v20, 8 }
  0x99   :  { %v634_v24 = vsub.s32 32, %v52_v22  ;;  %v64_v27 = vshll.u32 %v587_v26, %v52_v22  ;;  %v67_v29 = vshll.u32 %v588_v28, %v52_v22  ;;  %vm73_vm2 = vcmp.lt.s32.totalorder %v632_v21, 4 }
  0x9a   :  { %vm269_vm1 = vcmp.gt.s32.totalorder %v268_v23, 0  ;;  %v55_v37 = vshll.u32 %v590_v36, %v52_v22  ;;  %v58_v39 = vshll.u32 %v591_v38, %v52_v22  ;;  %v61_v41 = vshll.u32 %v592_v40, %v52_v22 }
  0x9b   :  { %v65_v31 = vshrl.u32 %v588_v28, %v634_v24  ;;  %v68_v33 = vshrl.u32 %v589_v32, %v634_v24  ;;  %v270_v34 = vsel %vm269_vm1, %v268_v23, 0  ;;  %v56_v44 = vshrl.u32 %v591_v38, %v634_v24 }
  0x9c   :  { %v272_v35 = vand.u32 31, %v270_v34  ;;  %v271_v43 = vshrl.u32 %v270_v34, 5  ;;  %v59_v45 = vshrl.u32 %v592_v40, %v634_v24  ;;  %v62_v49 = vshrl.u32 %v587_v26, %v634_v24 }
  0x9d   :  { %v66_v42 = vor.u32 %v65_v31, %v64_v27  ;;  %v69_v46 = vor.u32 %v68_v33, %v67_v29  ;;  %vm70_vm3 = vcmp.lt.s32.totalorder %v632_v21, 1  ;;  %v57_v2 = vor.u32 %v56_v44, %v55_v37 }
  0x9e   :  { %v273_v47 = vsub.s32 32, %v272_v35  ;;  %v275_v48 = vshll.u32 %v590_v36, %v272_v35  ;;  %v278_v51 = vshll.u32 %v591_v38, %v272_v35  ;;  %v281_v52 = vshll.u32 %v592_v40, %v272_v35 }
  0x9f   :  { %v79_v50 = vsel %vm73_vm2, %v66_v42, 920167782  ;;  %v284_v53 = vshll.u32 %v587_v26, %v272_v35  ;;  %v287_v57 = vshll.u32 %v588_v28, %v272_v35  ;;  %vm290_vm4 = vcmp.lt.s32.totalorder %v271_v43, 1 }
  0xa0   :  { %v276_v54 = vshrl.u32 %v591_v38, %v273_v47  ;;  %v279_v55 = vshrl.u32 %v592_v40, %v273_v47  ;;  %v282_v56 = vshrl.u32 %v587_v26, %v273_v47  ;;  %v274_v58 = vshrl.u32 %v590_v36, %v273_v47 }
  0xa1   :  { %v285_v59 = vshrl.u32 %v588_v28, %v273_v47  ;;  %v288_v60 = vshrl.u32 %v589_v32, %v273_v47  ;;  %vm292_vm5 = vcmp.lt.s32.totalorder %v271_v43, 3  ;;  %vm293_vm6 = vcmp.lt.s32.totalorder %v271_v43, 4 }
  0xa2   :  { %v277_v61 = vor.u32 %v276_v54, %v275_v48  ;;  %v280_v62 = vor.u32 %v279_v55, %v278_v51  ;;  %v283_v63 = vor.u32 %v282_v56, %v281_v52  ;;  %v60_v14 = vor.u32 %v59_v45, %v58_v39 }
  0xa3   :  { %v286_v0 = vor.u32 %v285_v59, %v284_v53  ;;  %v289_v1 = vor.u32 %v288_v60, %v287_v57  ;;  %vm291_vm7 = vcmp.lt.s32.totalorder %v271_v43, 2  ;;  %v63_v18 = vor.u32 %v62_v49, %v61_v41 }
  0xa4   :  { %v294_v3 = vsel %vm290_vm4, %v274_v58, %v277_v61  ;;  %v295_v4 = vsel %vm293_vm6, %v283_v63, 2102212464  ;;  %v298_v6 = vsel %vm290_vm4, %v277_v61, %v280_v62  ;;  %v302_v7 = vsel %vm290_vm4, %v280_v62, %v283_v63 }
  0xa5   :  { %v296_v8 = vsel %vm292_vm5, %v280_v62, %v295_v4  ;;  %v299_v10 = vsel %vm293_vm6, %v286_v0, 920167782  ;;  %v303_v13 = vsel %vm293_vm6, %v289_v1, 1326507024  ;;  %v83_v19 = vsel %vm73_vm2, %v69_v46, 1326507024 }
  0xa6   :  { %v300_v15 = vsel %vm292_vm5, %v283_v63, %v299_v10  ;;  %v304_v16 = vsel %vm292_vm5, %v286_v0, %v303_v13  ;;  %v297_v20 = vsel %vm291_vm7, %v294_v3, %v296_v8  ;;  %v54_v31 = vshrl.u32 %v590_v36, %v634_v24 }
  0xa7   :  { %v301_v22 = vsel %vm291_vm7, %v298_v6, %v300_v15  ;;  %v305_v23 = vsel %vm291_vm7, %v302_v7, %v304_v16  ;;  %vm72_vm8 = vcmp.lt.s32.totalorder %v632_v21, 3  ;;  %v75_v32 = vsel %vm73_vm2, %v63_v18, 2102212464 }
  0xa8   :  { %v651_v26 = vmul.u32.u64.low %v637_v30, %v305_v23  ;;  %v652_v27 = vmul.u32.u64.high %v637_v30, %v305_v23, %v651_v26  ;;  %v655_v28 = vmul.u32.u64.low %v637_v30, %v301_v22  ;;  %v656_v29 = vmul.u32.u64.high %v637_v30, %v301_v22, %v655_v28 }
  0xa9   :  { %v78_v33 = vsel %vm70_vm3, %v57_v2, %v60_v14  ;;  %vm71_vm9 = vcmp.lt.s32.totalorder %v632_v21, 2  ;;  %v80_v34 = vsel %vm72_vm8, %v63_v18, %v79_v50  ;;  %v82_v35 = vsel %vm70_vm3, %v60_v14, %v63_v18 }
  0xaa   :  { %v84_v37 = vsel %vm72_vm8, %v66_v42, %v83_v19  ;;  %v313_v24 = vmul.u32 %v637_v30, %v297_v20  ;;  %v81_v36 = vsel %vm71_vm9, %v78_v33, %v80_v34  ;;  %v86_v39 = vshll.u32 %v46_v25, 8 }
  0xab   :  { %v85_v38 = vsel %vm71_vm9, %v82_v35, %v84_v37  ;;  %vm315_vm10 = vc.u32 %v652_v27, %v655_v28  ;;  %v316_v40 = vadd.s32 1, %v656_v29  ;;  %v74_v41 = vsel %vm70_vm3, %v54_v31, %v57_v2 }
  0xac   :  { %v76_v42 = vsel %vm72_vm8, %v60_v14, %v75_v32  ;;  %v684_v30 = vmul.u32.u64.low %v86_v39, %v85_v38  ;;  %v685_v43 = vmul.u32.u64.high %v86_v39, %v85_v38, %v684_v30  ;;  %v314_v2 = vadd.s32 %v655_v28, %v652_v27 }
  0xad   :  { %v687_v44 = vmul.u32.u64.low %v86_v39, %v81_v36  ;;  %v688_v45 = vmul.u32.u64.high %v86_v39, %v81_v36, %v687_v44  ;;  %v317_v46 = vsel %vm315_vm10, %v316_v40, %v656_v29  ;;  %v77_v25 = vsel %vm71_vm9, %v74_v41, %v76_v42 }
  0xae   :  { %v318_v17 = vadd.s32 %v317_v46, %v313_v24  ;;  %v93_v49 = vmul.u32 %v86_v39, %v77_v25  ;;  %vm39_vm1 = vcmp.le.f32.partialorder %v38_v11, 0.7853982  ;;  %vm141_vm2 = vcmask 123904  }
  0xaf   :  { %vm95_vm11 = vc.u32 %v685_v43, %v687_v44  ;;  %v96_v48 = vadd.s32 1, %v688_v45  ;;  %v94_v16 = vadd.s32 %v687_v44, %v685_v43 }
  0xb0   :  { %v319_v47 = vadd.s32 536870912, %v318_v17 }
  0xb1   :  { %v97_v51 = vsel %vm95_vm11, %v96_v48, %v688_v45 }
  0xb2   :  { %v695_v50 = vshrl.u32 %v319_v47, 30  ;;  %v98_v52 = vadd.s32 %v97_v51, %v93_v49 }
  0xb4   :  { %v321_v53 = vshll.u32 %v695_v50, 30  ;;  %v99_v54 = vadd.s32 536870912, %v98_v52  ;;  %v344_v30 = vsub.s32 4, %v695_v50 }
  0xb6   :  { %v322_v55 = vsub.s32 %v318_v17, %v321_v53  ;;  %v100_v56 = vshrl.u32 %v99_v54, 30  ;;  %v345_v44 = vsel %vm260_vm14, %v344_v30, %v695_v50 }
  0xb7   :  { %v347_v46 = vsel %vm706_vm15, 0, %v345_v44 }
  0xb8   :  { %v324_v57 = vsub.s32 0, %v322_v55  ;;  %v101_v58 = vshll.u32 %v100_v56, 30  ;;  %v124_v41 = vsub.s32 4, %v100_v56  ;;  %v351_v11 = vand.u32 3, %v347_v46 }
  0xb9   :  { %v460_v49 = vadd.s32 3, %v347_v46 }
  0xba   :  { %v502_v21 = vmin.u32 %v324_v57, %v322_v55  ;;  %v102_v59 = vsub.s32 %v98_v52, %v101_v58  ;;  %v125_v43 = vsel %vm40_vm0, %v124_v41, %v100_v56  ;;  %vm352_vm3 = vcmp.lt.s32.totalorder %v351_v11, 2 }
  0xbb   :  { %v127_v45 = vsel %vm39_vm1, 0, %v125_v43  ;;  %vm353_vm4 = vcmp.eq.s32.totalorder %v351_v11, 0  ;;  %vm356_vm6 = vcmp.eq.s32.totalorder %v351_v11, 2  ;;  %v461_v56 = vand.u32 3, %v460_v49 }
  0xbc   :  { %v326_v60 = vclz %v502_v21  ;;  %v104_v61 = vsub.s32 0, %v102_v59  ;;  %v236_v17 = vadd.s32 3, %v127_v45  ;;  %v131_v48 = vand.u32 3, %v127_v45 }
  0xbe   :  { %v503_v62 = vadd.s32 4294967294, %v326_v60  ;;  %v494_v63 = vmin.u32 %v104_v61, %v102_v59  ;;  %v237_v51 = vand.u32 3, %v236_v17  ;;  %vm136_vm5 = vcmp.eq.s32.totalorder %v131_v48, 2 }
  0xbf   :  { %vm133_vm8 = vcmp.eq.s32.totalorder %v131_v48, 0  ;;  %vm132_vm10 = vcmp.lt.s32.totalorder %v131_v48, 2 }
  0xc0   :  { %vm504_vm12 = vcmp.lt.s32.totalorder %v503_v62, 0  ;;  %v106_v1 = vclz %v494_v63  ;;  %vm242_vm7 = vcmp.eq.s32.totalorder %v237_v51, 2  ;;  %vm239_vm9 = vcmp.eq.s32.totalorder %v237_v51, 0 }
  0xc1   :  { %v329_v0 = vsel %vm504_vm12, 0, %v503_v62  ;;  %vm238_vm11 = vcmp.lt.s32.totalorder %v237_v51, 2  ;;  %vm130_vm12 = vweird.f32 %v618_v5 }
  0xc2   :  { %v330_v3 = vsub.s32 32, %v329_v0  ;;  %v334_v4 = vsub.s32 4294967266, %v329_v0  ;;  %v495_v6 = vadd.s32 4294967294, %v106_v1  ;;  %v331_v7 = vshll.u32 %v322_v55, %v329_v0 }
  0xc4   :  { %v332_v8 = vshrl.u32 %v314_v2, %v330_v3  ;;  %v335_v10 = vadd.s32 127, %v334_v4  ;;  %vm496_vm13 = vcmp.lt.s32.totalorder %v495_v6, 0 }
  0xc5   :  { %v109_v15 = vsel %vm496_vm13, 0, %v495_v6  ;;  %vm350_vm13 = vweird.f32 %v621_v9 }
  0xc6   :  { %v333_v13 = vor.u32 %v332_v8, %v331_v7  ;;  %v336_v14 = vshll.u32 %v335_v10, 23  ;;  %v110_v18 = vsub.s32 32, %v109_v15  ;;  %v114_v19 = vsub.s32 4294967266, %v109_v15 }
  0xc7   :  { %v111_v22 = vshll.u32 %v102_v59, %v109_v15 }
  0xc8   :  { %v337_v20 = vor.u32 4788187, %v336_v14  ;;  %v112_v23 = vshrl.u32 %v94_v16, %v110_v18  ;;  %v115_v26 = vadd.s32 127, %v114_v19  ;;  %v340_v27 = vcvt.s32.f32 %v333_v13 }
  0xca   :  { %v338_v29 = vand.u32 2147483647, %v337_v20  ;;  %v113_v28 = vor.u32 %v112_v23, %v111_v22  ;;  %v116_v31 = vshll.u32 %v115_v26, 23 }
  0xcc   :  { %v341_v32 = vmul.f32 %v340_v27, %v338_v29  ;;  %v117_v33 = vor.u32 4788187, %v116_v31  ;;  %v120_v37 = vcvt.s32.f32 %v113_v28 }
  0xce   :  { %v342_v34 = vxor.u32 2147483648, %v341_v32  ;;  %v118_v35 = vand.u32 2147483647, %v117_v33 }
  0xd0   :  { %v343_v24 = vsel %vm260_vm14, %v342_v34, %v341_v32  ;;  %v121_v38 = vmul.f32 %v120_v37, %v118_v35  ;;  %vm463_vm14 = vcmp.eq.s32.totalorder %v461_v56, 0 }
  0xd1   :  { %v346_v39 = vsel %vm706_vm15, %v621_v9, %v343_v24  ;;  %vm466_vm15 = vcmp.eq.s32.totalorder %v461_v56, 2 }
  0xd2   :  { %532 = vcosq.f32 %v346_v39  ;;  %v122_v40 = vxor.u32 2147483648, %v121_v38 }
  0xd3   :  { %534 = vsinq.f32 %v346_v39 }
  0xd4   :  { %v123_v42 = vsel %vm40_vm0, %v122_v40, %v121_v38  ;;  %vm462_vm0 = vcmp.lt.s32.totalorder %v461_v56, 2 }
  0xd5   :  { %v126_v12 = vsel %vm39_vm1, %v618_v5, %v123_v42  ;;  %vm251_vm1 = vcmask 255104  }
  0xd6   :  { %536 = vcosq.f32 %v126_v12 }
  0xd7   :  { %538 = vsinq.f32 %v126_v12 }
  0xdf   :  { %v533_v25 = vpop.eup %532 }
  0xe0   :  { %v535_v47 = vpop.eup %534  ;;  %v357_v53 = vxor.u32 2147483648, %v533_v25 }
  0xe1   :  { %v354_v52 = vxor.u32 2147483648, %v535_v47 }
  0xe2   :  { %v358_v21 = vsel %vm356_vm6, %v357_v53, %v535_v47  ;;  %v468_v7 = vsel %vm466_vm15, %v357_v53, %v535_v47 }
  0xe3   :  { %v537_v54 = vpop.eup %536  ;;  %v355_v58 = vsel %vm353_vm4, %v533_v25, %v354_v52  ;;  %v465_v6 = vsel %vm463_vm14, %v533_v25, %v354_v52 }
  0xe4   :  { %v539_v55 = vpop.eup %538  ;;  %v137_v50 = vxor.u32 2147483648, %v537_v54  ;;  %v359_v1 = vsel %vm352_vm3, %v355_v58, %v358_v21  ;;  %v469_v5 = vsel %vm462_vm0, %v465_v6, %v468_v7  ;;  %vm365_vm3 = vcmask 386304  }
  0xe5   :  { %v134_v57 = vxor.u32 2147483648, %v539_v55  ;;  %v360_v4 = vsel %vm350_vm13, nan, %v359_v1  ;;  %v470_v8 = vsel %vm350_vm13, nan, %v469_v5 }
  0xe6   :  { %v244_v59 = vsel %vm242_vm7, %v137_v50, %v539_v55  ;;  %v138_v60 = vsel %vm136_vm5, %v137_v50, %v539_v55 }
  0xe7   :  { %v241_v61 = vsel %vm239_vm9, %v537_v54, %v134_v57  ;;  %v135_v62 = vsel %vm133_vm8, %v537_v54, %v134_v57 }
  0xe8   :  { %v245_v63 = vsel %vm238_vm11, %v241_v61, %v244_v59  ;;  %v139_v0 = vsel %vm132_vm10, %v135_v62, %v138_v60 }
  0xe9   :  { %v246_v2 = vsel %vm130_vm12, nan, %v245_v63  ;;  %v140_v3 = vsel %vm130_vm12, nan, %v139_v0 }
  0xea   :  { %248 = vrot.lane.b32.xlu1 %v246_v2, %s593_s0  ;;  %142 = vst.msk [vmem:[#allocation5] sm:$0x3] %vm141_vm2, %v140_v3  ;;  %vm475_vm2 = vcmask 517504  }
  0xee   :  { %362 = vrot.lane.b32.xlu1 %v360_v4, %s594_s1 }
  0xf2   :  { %472 = vrot.lane.b32.xlu1 %v470_v8, %s595_s16 }
 0x15c   :  { %v249_v10 = vpop.permute.xlu1 %248 }
 0x15d   :  { %252 = vst.msk [vmem:[#allocation5] sm:$0x3] %vm251_vm1, %v249_v10 }
 0x160   :  { %v363_v13 = vpop.permute.xlu1 %362 }
 0x161   :  { %366 = vst.msk [vmem:[#allocation5] sm:$0x3] %vm365_vm3, %v363_v13 }
 0x164   :  { %v473_v9 = vpop.permute.xlu1 %472 }
 0x165   :  { %476 = vst.msk [vmem:[#allocation5] sm:$0x3] %vm475_vm2, %v473_v9 }
 0x166   :  { %571 = shalt.err (!%p568_p9)
}
 0x167   :  { %486 = dma.vmem_to_hbm [thread:$0]  %s484_s18, 32, %s732_s2, [#allocation4]  }
 0x168   :  { %582 = dma.done.wait [#allocation4], 32  }
 0x169   :  { %583 = vsyncadd [#allocation4], 4294967264 }
 0x16a   :  { %490 = vsyncpa [#allocation3], 1 }
 0x16b   :  { %491 = vsyncpa [#allocation4], 1 }

</bundles_post_ra>
